<compile_context>
chip_gen: v7x
topology: tpu7x:2x2x1
jax: 0.10.0
libtpu: 0.0.40
codegen_flags: <defaults>
</compile_context>

<pallas_src>
import math

import jax
import jax.numpy as jnp
import numpy as np
from jax.experimental import pallas as pl
from jax.experimental.pallas import tpu as pltpu


def _linear_kernel(x_ref, w_ref, o_ref):
    # (tm, d_inp) contracted with (d_model, d_inp) on the shared d_inp axis
    # -> (tm, d_model), f32 MXU accumulation.  Equivalent to x @ W.T.
    o_ref[...] = jax.lax.dot_general(
        x_ref[...], w_ref[...],
        dimension_numbers=(((1,), (1,)), ((), ())),
        preferred_element_type=jnp.float32,
    ).astype(o_ref.dtype)


def _round_up(v, m):
    return ((v + m - 1) // m) * m


def time_feature_embedding(x_mark, weight, *, tile_m=2048,
                           min_pallas_bytes=1 << 20,
                           out_dtype=jnp.float32):
    """Forward of TimeFeatureEmbedding.

    x_mark: (B, L, d_inp) f32 calendar features.
    weight: (d_model, d_inp) f32 — the nn.Linear(bias=False) weight.
    returns (B, L, d_model) in out_dtype (default f32, matching nn.Linear).
    """
    B, L, d_inp = x_mark.shape
    d_model, d_inp_w = weight.shape
    assert d_inp_w == d_inp

    M = B * L

    # Small-M fast path: dispatch + per-step overhead would dominate; XLA's fused
    # matmul is strictly faster at toy / short-sequence sizes.
    if M * d_model * 4 < min_pallas_bytes:
        return jnp.einsum('bld,md->blm', x_mark, weight).astype(out_dtype)

    x2 = x_mark.reshape(M, d_inp)

    # Row tile selection:
    #   * multiple of 8 (sublane alignment),
    #   * at least 2 grid steps so the "parallel" axis shards across both v7x cores,
    #   * capped so the double-buffered footprint stays well inside scoped VMEM on
    #     every generation (v5e 16 MiB default, v7x 32 MiB scoped / 64 MiB physical).
    half_rows = max(8, _round_up(pl.cdiv(M, 2), 8))
    tm = min(tile_m, half_rows)
    # Per-row VMEM bytes: output tile row (d_model f32) + x tile row lane-padded to 128.
    per_row_bytes = (d_model + 128) * 4
    vmem_budget = 24 * 1024 * 1024
    tm_cap = max(8, (vmem_budget // (2 * per_row_bytes)) // 8 * 8)
    tm = max(8, min(tm, tm_cap))

    grid_m = pl.cdiv(M, tm)  # ragged last block: Pallas masks OOB writes.

    # Explicit VMEM limit sized to the double-buffered tiles (+ weight + slack).
    w_bytes = 2 * d_model * max(d_inp, 128) * 4
    vmem_limit = int(min(2 * tm * per_row_bytes + w_bytes + (4 << 20),
                         32 * 1024 * 1024))

    out = pl.pallas_call(
        _linear_kernel,
        out_shape=jax.ShapeDtypeStruct((M, d_model), out_dtype),
        grid=(grid_m,),
        in_specs=[
            pl.BlockSpec((tm, d_inp), lambda i: (i, 0)),
            pl.BlockSpec((d_model, d_inp), lambda i: (0, 0)),
        ],
        out_specs=pl.BlockSpec((tm, d_model), lambda i: (i, 0)),
        compiler_params=pltpu.CompilerParams(
            dimension_semantics=("parallel",),
            vmem_limit_bytes=vmem_limit,
        ),
    )(x2, weight)

    return out.reshape(B, L, d_model)


def reference(x_mark, weight):
    """Pure-JAX reference: x @ W.T (bias-free linear)."""
    return jnp.einsum('bld,md->blm', x_mark, weight)


if __name__ == "__main__":
    key = jax.random.PRNGKey(0)

    # Shapes implied by the module: d_inp = len(cal_vars), small test config.
    B, L, d_model = 2, 16, 32
    cal_vars = ['month', 'dayweek', 'day', 'hour']
    d_inp = len(cal_vars)

    k1, k2 = jax.random.split(key, 2)
    # timeF-style features are typically small/centered; uniform in [-0.5, 0.5].
    x_mark = jax.random.uniform(k1, (B, L, d_inp), dtype=jnp.float32,
                                minval=-0.5, maxval=0.5)

    # nn.Linear default init: kaiming_uniform(a=sqrt(5)) -> U(-1/sqrt(fan_in), 1/sqrt(fan_in)).
    bound = 1.0 / math.sqrt(d_inp)
    weight = jax.random.uniform(k2, (d_model, d_inp), dtype=jnp.float32,
                                minval=-bound, maxval=bound)

    ref = reference(x_mark, weight)

    # Force the Pallas path (the default small-M fast path would route this toy
    # shape to plain XLA) so the kernel itself is exercised and validated.
    out = time_feature_embedding(x_mark, weight, min_pallas_bytes=0)
    jax.block_until_ready(out)
    np.testing.assert_allclose(np.asarray(out), np.asarray(ref), rtol=1e-5, atol=1e-5)

    # Default path (small-M fallback) for completeness.
    out_fast = time_feature_embedding(x_mark, weight)
    jax.block_until_ready(out_fast)
    np.testing.assert_allclose(np.asarray(out_fast), np.asarray(ref), rtol=1e-5, atol=1e-5)

    print("KERNEL_OK")
</pallas_src>

<mosaic_0001>
module attributes {stable_mosaic.version = 11 : i64} {
  func.func @_linear_kernel(%arg0: i32, %arg1: memref<16x4xf32, #tpu.memory_space<vmem>>, %arg2: memref<32x4xf32, #tpu.memory_space<vmem>>, %arg3: memref<16x32xf32, #tpu.memory_space<vmem>>) attributes {dimension_semantics = [#tpu.dimension_semantics<parallel>], iteration_bounds = array<i64: 2>, scalar_prefetch = 0 : i64, scratch_operands = 0 : i64, tpu.core_type = #tpu.core_type<tc>, window_params = [{transform_indices = @transform_0, window_bounds = array<i64: 16, 4>}, {pipeline_mode = #tpu.pipeline_mode<synchronous>, transform_indices = @transform_1, window_bounds = array<i64: 32, 4>}, {transform_indices = @transform_2, window_bounds = array<i64: 16, 32>}]} {
    %c0 = arith.constant 0 : index
    %c0_0 = arith.constant 0 : index
    %0 = vector.load %arg1[%c0, %c0_0] : memref<16x4xf32, #tpu.memory_space<vmem>>, vector<16x4xf32>
    %c0_1 = arith.constant 0 : index
    %c0_2 = arith.constant 0 : index
    %1 = vector.load %arg2[%c0_1, %c0_2] : memref<32x4xf32, #tpu.memory_space<vmem>>, vector<32x4xf32>
    %cst = arith.constant dense<0.000000e+00> : vector<16x32xf32>
    %2 = tpu.matmul %0, %1, %cst {dimension_numbers = #tpu.dot_dimension_numbers<[1], [1], [0], [0], [0, 0, 1, 0], [], []>} : vector<16x4xf32>, vector<32x4xf32>, vector<16x32xf32> -> vector<16x32xf32>
    %c0_3 = arith.constant 0 : index
    %c0_4 = arith.constant 0 : index
    %3 = vector.load %arg3[%c0_3, %c0_4] : memref<16x32xf32, #tpu.memory_space<vmem>>, vector<16x32xf32>
    tpu.vector_store %arg3[%c0_3, %c0_4], %2 {strides = array<i32>} : memref<16x32xf32, #tpu.memory_space<vmem>>, vector<16x32xf32>,
    return
  }
  func.func @transform_0(%arg0: i32) -> (i32, i32) {
    %c0_i32 = arith.constant 0 : i32
    %c0_i32_0 = arith.constant 0 : i32
    return %arg0, %c0_i32 : i32, i32
  }
  func.func @transform_1(%arg0: i32) -> (i32, i32) {
    %c0_i32 = arith.constant 0 : i32
    %c0_i32_0 = arith.constant 0 : i32
    %c0_i32_1 = arith.constant 0 : i32
    return %c0_i32, %c0_i32_0 : i32, i32
  }
  func.func @transform_2(%arg0: i32) -> (i32, i32) {
    %c0_i32 = arith.constant 0 : i32
    %c0_i32_0 = arith.constant 0 : i32
    return %arg0, %c0_i32 : i32, i32
  }
}

</mosaic_0001>

<bundles_post_ra>
// kernel: tpu_custom_call.1
= control target key start
LH: loop header
LB: loop body
LE: loop exit
PB: predicated region body
PF: predicated region fallthrough
CT: control target
= control target key end

     0   :  { %7 = vsyncpa [#allocation3], 0  ;;  %s613_s0 = inlined_call_operand.vmem [shape: f32[32,4], index: 0, kind: input, shape index: {}]   ;;  %s614_s1 = inlined_call_operand.vmem [shape: f32[32,4], index: 1, kind: input, shape index: {}]   ;;  %s615_s2 = inlined_call_operand.hbm [shape: f32[32,32], index: 2, kind: output, shape index: {}]  }
   0x1   :  { %9 = vsyncpa [#allocation3 + $0x1], 0  ;;  %s495_s9 = smov 0   ;;  %s497_s10 = smov 0  }
   0x2   :  { %s499_s11 = smov 0   ;;  %s501_s12 = smov 0  }
   0x3 LB: > { %s516_s13 = sadd.s32 4294967295, %s475_s12   ;;  %s324_s14 = sadd.s32 4294967294, %s475_s12   ;;  %s475_s12 = sphi %s501_s12, %s621_s12   ;;  %s471_s11 = sphi %s499_s11, %s620_s11   ;;  %s467_s10 = sphi %s497_s10, %s619_s10   ;;  %s463_s9 = sphi %s495_s9, %s618_s9  }
   0x4   : > { %s520_s15 = sadd.s32 1, %s475_s12   ;;  %s69_s16 = sadd.s32 1, %s471_s11 }
   0x5   : > { %s66_s17 = ssub.s32 %s475_s12, %s520_s15  ;;  %p79_p0 = scmp.ne.s32.totalorder %s471_s11, %s467_s10 }
   0x6   : > { %p67_p1 = scmp.eq.s32.totalorder %s66_s17, 0  ;;  %p80_p2 = scmp.eq.s32.totalorder %s516_s13, 1 }
   0x7   : > { %p85_p3 = scmp.ne.s32.totalorder %s467_s10, %s463_s9  ;;  %p86_p4 = scmp.eq.s32.totalorder %s324_s14, 1 }
   0x8   : > { %s531_s18 = scalar_select %p67_p1, %s471_s11, %s69_s16  }
   0x9   : > { %p533_p5 = por %p80_p2, %p79_p0  ;;  %p537_p6 = por %p86_p4, %p85_p3 }
   0xa   : > { %p327_p7 = scmp.ge.s32.totalorder %s475_s12, 1  ;;  %p116_p8 = scmp.lt.s32.totalorder %s475_s12, 3 }
   0xc   : > { %p117_p9 = pnand %p327_p7, %p116_p8 }
   0xd   : > { %v147_v0 = vld [vmem:[%s614_s1] sm:$0xff] (!%p117_p9)  ;;  %v148_v1 = vld [vmem:[%s614_s1 + $0x8] sm:$0xff] (!%p117_p9)  ;;  %vm151_vm0 = vcmask (!%p117_p9), 31744   ;;  %v149_v2 = vld [vmem:[%s614_s1 + $0x10] sm:$0xff] (!%p117_p9)  ;;  %s329_s27 = sshll.u32 (!%p117_p9), %s516_s13, 1  ;;  %s135_s6 = sand.u32 (!%p117_p9), 1, %s467_s10  }
   0xe   : > { %120 = sbr.rel (%p117_p9) target bundleno = 260 (0x104), region = 28  ;;  %v360_v3 = vpack.c.bf16 (!%p117_p9), %v148_v1, %v147_v0  ;;  %vm361_vm1 = vmpackc.low (!%p117_p9), %vm151_vm0, %vm151_vm0  ;;  %v150_v4 = vld [vmem:[%s614_s1 + $0x18] sm:$0xff] (!%p117_p9)  ;;  %p139_p10 = scmp.lt.s32.totalorder (!%p117_p9), %s329_s27, 3  ;;  %vm245_vm2 = vcmask (!%p117_p9), 261120  }
   0xf   : > { %v366_v5 = vpack.c.bf16 (!%p117_p9), %v150_v4, %v149_v2  ;;  %s328_s7 = sshll.u32 (!%p117_p9), %s135_s6, 4  ;;  %s342_s16 = sshll.u32 (!%p117_p9), %s516_s13, 8 }
  0x10   : > { %362 = vmatprep.subr.msk.bf16.mxu0 (!%p117_p9), %vm361_vm1, %v360_v3  ;;  %s137_s8 = scalar_lea.vmem (!%p117_p9), [#allocation2], %s328_s7  ;;  %s570_s22 = scalar_lea.hbm (!%p117_p9), %s615_s2, %s342_s16 }
  0x11   : > { %365 = vmatpush3.bf16.xpose.msk.msra.mxu0 (!%p117_p9), %vm361_vm1, %v360_v3  ;;  %s262_s14 = sshll.u32 (!%p117_p9), %s137_s8, 4  ;;  %s572_s23 = scalar_lea.sflag (!%p117_p9), [#allocation3], %s135_s6  ;;  %s565_s14 = int_to_ptr.vmem [resolvable:$true] %s262_s14 }
  0x12   : > { %368 = vmatprep.subr.msk.bf16.mxu0 (!%p117_p9), %vm361_vm1, %v366_v5  ;;  %s413_s24 = scalar_lea.vmem (!%p117_p9), %s565_s14, 256  ;;  %s477_s13 = smov (!%p117_p9), [#allocation2]  }
  0x13   : > { %p414_p11 = scmp.ne.s32.totalorder (!%p117_p9), %s565_s14, %s413_s24  ;;  %s417_s25 = sshll.u32 (!%p117_p9), %s477_s13, 4  ;;  %s418_s25 = int_to_ptr.vmem [resolvable:$false] %s417_s25 }
  0x14   : > { %s419_s26 = scalar_lea.vmem (!%p117_p9), %s418_s25, 512  ;;  %p420_p0 = scmp.lt.s32.totalorder (!%p117_p9), %s565_s14, %s418_s25 }
  0x15   : > { %s623_s27 = smov (!%p139_p10, %s329_s27), 3  ;;  %p415_p12 = pnand %p414_p11, %p533_p5 }
  0x16   : > { %s330_s30 = sshll.u32 %s623_s27, 3  ;;  %p421_p1 = scmp.lt.s32.totalorder %s419_s26, %s413_s24 }
  0x17   : > { %s142_s5 = scalar_lea.vmem %s613_s0, %s330_s30  ;;  %p416_p13 = pneg %p415_p12 }
  0x18   : > { %v145_v6 = vld [vmem:[%s142_s5] sm:$0xff]  ;;  %v146_v7 = vld [vmem:[%s142_s5 + $0x8] sm:$0xff]  ;;  %p422_p2 = por %p421_p1, %p420_p0 }
  0x19   : > { %357 = vmatprep.mubr.msk.f32.mxu0 %vm151_vm0, %v145_v6  ;;  %371 = vmatpush3.bf16.xpose.msk.msra.mxu0 %vm361_vm1, %v366_v5 }
  0x1a   : > { %p423_p3 = pnand %p422_p2, %p416_p13 }
  0x20   : > { %358 = vmatmul.mubr.msk.f32.vlgmr.msra.gmra.mrb[0].mxu0 %vm151_vm0, %v146_v7 }
  0xf3   : > { %v359_v8 = vpop.f32.mrb[0].mxu0 }
  0xf4   : > { %247 = vst.msk [vmem:[%s137_s8 + $0x8] sm:$0xff] %vm245_vm2, %v359_v8  ;;  %v236_v9 = vpop.f32.mrb[1].mxu0 }
  0xf5   : > { %246 = vst.msk [vmem:[%s137_s8] sm:$0xff] %vm245_vm2, %v236_v9 }
  0xf6   : > { %426 = shalt.err (!%p423_p3)
}
  0xf7   : > { %s427_s27 = scalar_lea.hbm %s570_s22, 256  ;;  %s431_s30 = scalar_lea.hbm %s615_s2, 512 }
  0xf8   : > { %p428_p4 = scmp.ne.s32.totalorder %s570_s22, %s427_s27  ;;  %p432_p9 = scmp.lt.u32.totalorder %s570_s22, %s615_s2 }
  0xf9   : > { %p433_p10 = scmp.lt.u32.totalorder %s431_s30, %s427_s27  ;;  %p435_p12 = scmp.lt.u32.totalorder %s427_s27, %s570_s22 }
  0xfa   : > { %p429_p7 = pnand %p428_p4, %p533_p5 }
  0xfb   : > { %p434_p11 = por %p433_p10, %p432_p9 }
  0xfc   : > { %p430_p8 = pneg %p429_p7 }
  0xfd   : > { %p436_p13 = por %p435_p12, %p434_p11 }
  0xff   : > { %p437_p0 = pnand %p436_p13, %p430_p8 }
 0x101   : > { %440 = shalt.err (!%p437_p0)
}
 0x102   : > { %s478_s5 = smov 128   ;;  %s479_s6 = smov 8  }
 0x103   : > { %372 = dma.vmem_to_hbm [thread:$0]  (%p533_p5), %s565_s14, 256, %s570_s22, %s572_s23, %s478_s5, %s478_s5, %s479_s6  }
 0x104 PF: > { %p378_p1 = scmp.ge.s32.totalorder %s475_s12, 2  ;;  %s277_s7 = sand.u32 1, %s463_s9  }
 0x105   : > { %s278_s8 = scalar_lea.sflag [#allocation3], %s277_s7 }
 0x106   : > { %p375_p2 = pnand %p378_p1, %p537_p6 }
 0x108   : > { %458 = dma.done.wait (!%p375_p2), %s278_s8, 256  }
 0x109   : > { %460 = vsyncadd (!%p375_p2), %s278_s8, 4294967040  ;;  %p12_p3 = scmp.ge.s32.totalorder %s520_s15, 4   ;;  %s618_s9 = smov %s467_s10 }
 0x10a   : > { %s619_s10 = smov %s471_s11  ;;  %s620_s11 = smov %s531_s18 }
 0x10b   : > { %s621_s12 = smov %s520_s15  ;;  %14 = sbr.rel (!%p12_p3) target bundleno = 3 (0x3), region = 63 }
 0x112   :  { %283 = vsyncpa [#allocation3], 1 }
 0x113   :  { %285 = vsyncpa [#allocation3 + $0x1], 1 }

</bundles_post_ra>
